<compile_context>
chip_gen: v6e
topology: v6e:2x2x1
jax: 0.10.0
libtpu: 0.0.40
codegen_flags: <defaults>
</compile_context>

<pallas_src>
import jax
import jax.numpy as jnp
from jax.experimental import pallas as pl
from jax.experimental.pallas import tpu as pltpu


# --------------------------------------------------------------------------- #
# Kernel
# --------------------------------------------------------------------------- #
def _make_kernel(D_out, compute_std, inv_m, inv_m1):
    def kernel(x_ref, w1_ref, b1_ref, w2_ref, b2_ref, sel_ref, rep_ref, out_ref):
        # x_ref:   [TB, D_in]                 (matmul dtype)
        # w1_ref:  [D_in, M*H]                (matmul dtype, all models folded)
        # b1_ref:  [1, M*H]                   (f32)
        # w2_ref:  [M*H, M*D_out] block-diag  (matmul dtype)
        # b2_ref:  [1, M*D_out]               (f32)
        # sel_ref: [M*D_out, D_out]  = kron(ones(M,1), I)   (f32)
        # rep_ref: [D_out, M*D_out]  = kron(ones(1,M), I)   (f32)
        # out_ref: [TB, D_out] (mean only) or [TB, 2*D_out] (packed mean|std)

        # Layer 1: one wide matmul for all M models at once (x shared).
        h = jnp.dot(x_ref[...], w1_ref[...], preferred_element_type=jnp.float32)
        h = jnp.maximum(h + b1_ref[...], 0.0)          # f32 elementwise (v5e-safe)

        # Layer 2: block-diagonal weights -> one matmul for all M models.
        y = jnp.dot(h.astype(w2_ref.dtype), w2_ref[...],
                    preferred_element_type=jnp.float32) + b2_ref[...]

        # Ensemble mean: full-width MXU reduction over the M lane-blocks.
        mean = jnp.dot(y, sel_ref[...], preferred_element_type=jnp.float32) * inv_m

        if not compute_std:
            out_ref[...] = mean.astype(out_ref.dtype)
            return

        # Two-pass unbiased variance, also MXU-driven (no per-model lane slices).
        mean_rep = jnp.dot(mean, rep_ref[...], preferred_element_type=jnp.float32)
        d = y - mean_rep
        var = jnp.dot(d * d, sel_ref[...], preferred_element_type=jnp.float32) * inv_m1
        std = jnp.sqrt(var)

        # Single lane-dense packed writeback (one store instead of two partials).
        out_ref[...] = jnp.concatenate([mean, std], axis=-1).astype(out_ref.dtype)

    return kernel


# --------------------------------------------------------------------------- #
# Host-side planning / parameter folding
# --------------------------------------------------------------------------- #
def _round_up(n, m):
    return ((n + m - 1) // m) * m


def _plan_tiles(B, D_in, M, H, D_out, out_w, w_itemsize):
    """Pick TB / grid / padded B and an explicit VMEM limit from a byte budget."""
    MH, MD = M * H, M * D_out

    # Grid-invariant operands resident in VMEM.  Counted x2 in case the
    # single-buffer request (pl.Buffered(1)) is not honored by this JAX build.
    weight_bytes = (D_in * MH + MH * MD) * w_itemsize      # W1 + block-diag W2
    weight_bytes += (MH + MD) * 4                          # biases (f32)
    weight_bytes += (MD * D_out + D_out * MD) * 4          # SEL / REP selectors (f32)
    weight_resident = 2 * weight_bytes

    # Live bytes per batch row inside one tile.
    per_row = 2 * D_in * w_itemsize                        # x tile (double-buffered)
    per_row += 2 * out_w * 4                               # out tile (double-buffered)
    per_row += MH * (4 + w_itemsize)                       # h (f32) + matmul-dtype copy
    per_row += 4 * MD * 4                                  # y, mean_rep, d, d*d (f32)
    per_row += 2 * D_out * 4                               # mean, std

    budget = 40 * 1024 * 1024   # conservative: fits v7x 64 MiB and a raised v5e limit
    avail = max(budget - weight_resident, 8 * per_row)
    tb_cap = max(8, min(512, (avail // per_row) // 8 * 8))

    TB = min(tb_cap, _round_up(B, 8))
    grid = pl.cdiv(B, TB)
    B_pad = grid * TB

    vmem_limit = weight_resident + TB * per_row + (4 << 20)   # + headroom
    vmem_limit = int(min(max(vmem_limit, 16 << 20), 64 << 20))
    return TB, grid, B_pad, vmem_limit


def _prep_params(w1, b1, w2, b2, matmul_dtype):
    """Fold the ensemble axis into the weight matrices (done once, on host)."""
    M, D_in, H = w1.shape
    D_out = w2.shape[-1]
    # [M, D_in, H] -> [D_in, M*H]; column block m holds model m's W1.
    w1_flat = jnp.transpose(w1, (1, 0, 2)).reshape(D_in, M * H).astype(matmul_dtype)
    b1_flat = b1.reshape(1, M * H).astype(jnp.float32)
    # Block-diagonal [M*H, M*D_out]: block (m, m) = W2_m, off-diagonal = 0.
    # TODO(synk): O(M^2) in bytes/FLOPs — switch to an M-batched contraction
    #             for large M instead of the dense block-diag matmul.
    eye_m = jnp.eye(M, dtype=w2.dtype)
    w2_bd = jnp.einsum("mho,mn->mhno", w2, eye_m).reshape(M * H, M * D_out)
    w2_bd = w2_bd.astype(matmul_dtype)
    b2_flat = b2.reshape(1, M * D_out).astype(jnp.float32)
    # Ensemble-reduction selector matrices (f32, exact 0/1 entries).
    eye_d = jnp.eye(D_out, dtype=jnp.float32)
    sel = jnp.tile(eye_d, (M, 1))     # [M*D_out, D_out]
    rep = jnp.tile(eye_d, (1, M))     # [D_out, M*D_out]
    return w1_flat, b1_flat, w2_bd, b2_flat, sel, rep


# --------------------------------------------------------------------------- #
# pallas_call wrapper
# --------------------------------------------------------------------------- #
def _run(x, w1, b1, w2, b2, *, compute_std, matmul_dtype=jnp.bfloat16):
    B, D_in = x.shape
    M, _, H = w1.shape
    D_out = w2.shape[-1]
    MH, MD = M * H, M * D_out
    out_w = 2 * D_out if compute_std else D_out

    w1f, b1f, w2bd, b2f, sel, rep = _prep_params(w1, b1, w2, b2, matmul_dtype)
    xq = x.astype(matmul_dtype)

    w_item = jnp.dtype(matmul_dtype).itemsize
    TB, grid, B_pad, vmem_limit = _plan_tiles(B, D_in, M, H, D_out, out_w, w_item)
    if B_pad != B:
        xq = jnp.pad(xq, ((0, B_pad - B), (0, 0)))

    inv_m = 1.0 / M
    # torch.std(unbiased=True) returns NaN for a single sample; match that.
    inv_m1 = (1.0 / (M - 1)) if M > 1 else float("nan")
    kernel = _make_kernel(D_out, compute_std, inv_m, inv_m1)

    def build(single_buffer_weights):
        def const_spec(shape):
            # Grid-invariant operand: request a single VMEM buffer (no double
            # buffering needed since the block index never changes).
            if single_buffer_weights:
                return pl.BlockSpec(shape, lambda i: (0, 0),
                                    pipeline_mode=pl.Buffered(1))
            return pl.BlockSpec(shape, lambda i: (0, 0))

        return pl.pallas_call(
            kernel,
            out_shape=jax.ShapeDtypeStruct((B_pad, out_w), jnp.float32),
            grid_spec=pltpu.PrefetchScalarGridSpec(
                num_scalar_prefetch=0,
                grid=(grid,),                                    # batch tiles only
                in_specs=[
                    pl.BlockSpec((TB, D_in), lambda i: (i, 0)),  # x tile
                    const_spec((D_in, MH)),                      # folded W1
                    const_spec((1, MH)),                         # b1
                    const_spec((MH, MD)),                        # block-diag W2
                    const_spec((1, MD)),                         # b2
                    const_spec((MD, D_out)),                     # SEL
                    const_spec((D_out, MD)),                     # REP
                ],
                out_specs=pl.BlockSpec((TB, out_w), lambda i: (i, 0)),
            ),
            compiler_params=pltpu.CompilerParams(
                # batch axis is embarrassingly parallel -> megacore sharding
                dimension_semantics=("parallel",),
                vmem_limit_bytes=vmem_limit,
            ),
        )

    args = (xq, w1f, b1f, w2bd, b2f, sel, rep)
    try:
        out = jax.block_until_ready(build(True)(*args))
    except Exception:
        # pipeline_mode=pl.Buffered(1) not supported on this JAX build:
        # fall back to default double-buffered grid-invariant inputs.
        out = jax.block_until_ready(build(False)(*args))
    return out[:B]


def estimator_pool_get_mean_std(x, w1, b1, w2, b2, matmul_dtype=jnp.bfloat16):
    """x: [B, D_in]; w1: [M, D_in, H]; b1: [M, H]; w2: [M, H, D_out]; b2: [M, D_out]."""
    D_out = w2.shape[-1]
    out = _run(x, w1, b1, w2, b2, compute_std=True, matmul_dtype=matmul_dtype)
    return out[:, :D_out], out[:, D_out:]


def estimator_pool_forward(x, w1, b1, w2, b2, matmul_dtype=jnp.bfloat16):
    # Mean-only path: std work is skipped entirely inside the kernel.
    return _run(x, w1, b1, w2, b2, compute_std=False, matmul_dtype=matmul_dtype)


# --------------------------------------------------------------------------- #
# Pure-JAX reference (same operand dtypes / f32 accumulation)
# --------------------------------------------------------------------------- #
def _reference(x, w1, b1, w2, b2, matmul_dtype=jnp.bfloat16):
    xd = x.astype(matmul_dtype)
    w1d = w1.astype(matmul_dtype)
    w2d = w2.astype(matmul_dtype)
    prec = (jax.lax.Precision.HIGHEST
            if jnp.dtype(matmul_dtype) == jnp.dtype(jnp.float32) else None)
    h = jnp.einsum("bd,mdh->mbh", xd, w1d,
                   preferred_element_type=jnp.float32, precision=prec) + b1[:, None, :]
    h = jnp.maximum(h, 0.0)
    ys = jnp.einsum("mbh,mho->mbo", h.astype(matmul_dtype), w2d,
                    preferred_element_type=jnp.float32, precision=prec) + b2[:, None, :]
    return ys.mean(axis=0), ys.std(axis=0, ddof=1)


# --------------------------------------------------------------------------- #
# Demo / self-check
# --------------------------------------------------------------------------- #
if __name__ == "__main__":
    key = jax.random.PRNGKey(0)
    B, D_in, H, D_out, M = 8, 16, 32, 8, 4

    k_x, k_w1, k_b1, k_w2, k_b2 = jax.random.split(key, 5)
    x = jax.random.normal(k_x, (B, D_in), dtype=jnp.float32)
    w1 = 0.1 * jax.random.normal(k_w1, (M, D_in, H), dtype=jnp.float32)
    b1 = 0.1 * jax.random.normal(k_b1, (M, H), dtype=jnp.float32)
    w2 = 0.1 * jax.random.normal(k_w2, (M, H, D_out), dtype=jnp.float32)
    b2 = 0.1 * jax.random.normal(k_b2, (M, D_out), dtype=jnp.float32)

    # forward (mean-only) path, default bf16 MXU operands
    mean_only = estimator_pool_forward(x, w1, b1, w2, b2)
    jax.block_until_ready(mean_only)

    # full get_mean_std path (bf16) vs bf16-matched reference
    p_mean, p_std = estimator_pool_get_mean_std(x, w1, b1, w2, b2)
    jax.block_until_ready((p_mean, p_std))
    ref_mean, ref_std = _reference(x, w1, b1, w2, b2, jnp.bfloat16)
    assert jnp.allclose(p_mean, ref_mean, atol=1e-3, rtol=1e-3)
    assert jnp.allclose(p_std, ref_std, atol=1e-3, rtol=1e-3)
    assert jnp.allclose(mean_only, ref_mean, atol=1e-3, rtol=1e-3)

    # float32 parity path (matches the PyTorch float32 semantics more closely)
    f_mean, f_std = estimator_pool_get_mean_std(x, w1, b1, w2, b2,
                                                matmul_dtype=jnp.float32)
    jax.block_until_ready((f_mean, f_std))
    rf_mean, rf_std = _reference(x, w1, b1, w2, b2, jnp.float32)
    assert jnp.allclose(f_mean, rf_mean, atol=1e-3, rtol=1e-3)
    assert jnp.allclose(f_std, rf_std, atol=1e-3, rtol=1e-3)

    print("KERNEL_OK")
</pallas_src>

<mosaic_0001>
module attributes {stable_mosaic.version = 11 : i64} {
  func.func @kernel(%arg0: i32, %arg1: memref<8x16xbf16, #tpu.memory_space<vmem>>, %arg2: memref<16x128xbf16, #tpu.memory_space<vmem>>, %arg3: memref<1x128xf32, #tpu.memory_space<vmem>>, %arg4: memref<128x32xbf16, #tpu.memory_space<vmem>>, %arg5: memref<1x32xf32, #tpu.memory_space<vmem>>, %arg6: memref<32x8xf32, #tpu.memory_space<vmem>>, %arg7: memref<8x32xf32, #tpu.memory_space<vmem>>, %arg8: memref<8x8xf32, #tpu.memory_space<vmem>>) attributes {dimension_semantics = [#tpu.dimension_semantics<parallel>], iteration_bounds = array<i64: 1>, scalar_prefetch = 0 : i64, scratch_operands = 0 : i64, tpu.core_type = #tpu.core_type<tc>, window_params = [{transform_indices = @transform_0, window_bounds = array<i64: 8, 16>}, {pipeline_mode = #tpu.pipeline_mode<synchronous>, transform_indices = @transform_1, window_bounds = array<i64: 16, 128>}, {pipeline_mode = #tpu.pipeline_mode<synchronous>, transform_indices = @transform_2, window_bounds = array<i64: 1, 128>}, {pipeline_mode = #tpu.pipeline_mode<synchronous>, transform_indices = @transform_3, window_bounds = array<i64: 128, 32>}, {pipeline_mode = #tpu.pipeline_mode<synchronous>, transform_indices = @transform_4, window_bounds = array<i64: 1, 32>}, {pipeline_mode = #tpu.pipeline_mode<synchronous>, transform_indices = @transform_5, window_bounds = array<i64: 32, 8>}, {pipeline_mode = #tpu.pipeline_mode<synchronous>, transform_indices = @transform_6, window_bounds = array<i64: 8, 32>}, {transform_indices = @transform_7, window_bounds = array<i64: 8, 8>}]} {
    %c0 = arith.constant 0 : index
    %c0_0 = arith.constant 0 : index
    %0 = vector.load %arg1[%c0, %c0_0] : memref<8x16xbf16, #tpu.memory_space<vmem>>, vector<8x16xbf16>
    %c0_1 = arith.constant 0 : index
    %c0_2 = arith.constant 0 : index
    %1 = vector.load %arg2[%c0_1, %c0_2] : memref<16x128xbf16, #tpu.memory_space<vmem>>, vector<16x128xbf16>
    %cst = arith.constant dense<0.000000e+00> : vector<8x128xf32>
    %2 = tpu.matmul %0, %1, %cst {dimension_numbers = #tpu.dot_dimension_numbers<[1], [0], [0], [1], [0, 0, 1, 1], [], []>} : vector<8x16xbf16>, vector<16x128xbf16>, vector<8x128xf32> -> vector<8x128xf32>
    %c0_3 = arith.constant 0 : index
    %c0_4 = arith.constant 0 : index
    %3 = vector.load %arg3[%c0_3, %c0_4] : memref<1x128xf32, #tpu.memory_space<vmem>>, vector<1x128xf32>
    %4 = vector.broadcast %3 : vector<1x128xf32> to vector<8x128xf32>
    %5 = arith.addf %2, %4 : vector<8x128xf32>
    %cst_5 = arith.constant 0.000000e+00 : f32
    %6 = vector.broadcast %cst_5 : f32 to vector<8x128xf32>
    %7 = arith.maximumf %5, %6 : vector<8x128xf32>
    %8 = arith.truncf %7 : vector<8x128xf32> to vector<8x128xbf16>
    %c0_6 = arith.constant 0 : index
    %c0_7 = arith.constant 0 : index
    %9 = vector.load %arg4[%c0_6, %c0_7] : memref<128x32xbf16, #tpu.memory_space<vmem>>, vector<128x32xbf16>
    %cst_8 = arith.constant dense<0.000000e+00> : vector<8x32xf32>
    %10 = tpu.matmul %8, %9, %cst_8 {dimension_numbers = #tpu.dot_dimension_numbers<[1], [0], [0], [1], [0, 0, 1, 1], [], []>} : vector<8x128xbf16>, vector<128x32xbf16>, vector<8x32xf32> -> vector<8x32xf32>
    %c0_9 = arith.constant 0 : index
    %c0_10 = arith.constant 0 : index
    %11 = vector.load %arg5[%c0_9, %c0_10] : memref<1x32xf32, #tpu.memory_space<vmem>>, vector<1x32xf32>
    %12 = vector.broadcast %11 : vector<1x32xf32> to vector<8x32xf32>
    %13 = arith.addf %10, %12 : vector<8x32xf32>
    %c0_11 = arith.constant 0 : index
    %c0_12 = arith.constant 0 : index
    %14 = vector.load %arg6[%c0_11, %c0_12] : memref<32x8xf32, #tpu.memory_space<vmem>>, vector<32x8xf32>
    %cst_13 = arith.constant dense<0.000000e+00> : vector<8x8xf32>
    %15 = tpu.matmul %13, %14, %cst_13 {dimension_numbers = #tpu.dot_dimension_numbers<[1], [0], [0], [1], [0, 0, 1, 1], [], []>} : vector<8x32xf32>, vector<32x8xf32>, vector<8x8xf32> -> vector<8x8xf32>
    %cst_14 = arith.constant 2.500000e-01 : f32
    %16 = vector.broadcast %cst_14 : f32 to vector<8x8xf32>
    %17 = arith.mulf %15, %16 : vector<8x8xf32>
    %c0_15 = arith.constant 0 : index
    %c0_16 = arith.constant 0 : index
    %18 = vector.load %arg8[%c0_15, %c0_16] : memref<8x8xf32, #tpu.memory_space<vmem>>, vector<8x8xf32>
    tpu.vector_store %arg8[%c0_15, %c0_16], %17 {strides = array<i32>} : memref<8x8xf32, #tpu.memory_space<vmem>>, vector<8x8xf32>,
    return
  }
  func.func @transform_0(%arg0: i32) -> (i32, i32) {
    %c0_i32 = arith.constant 0 : i32
    %c0_i32_0 = arith.constant 0 : i32
    return %arg0, %c0_i32 : i32, i32
  }
  func.func @transform_1(%arg0: i32) -> (i32, i32) {
    %c0_i32 = arith.constant 0 : i32
    %c0_i32_0 = arith.constant 0 : i32
    %c0_i32_1 = arith.constant 0 : i32
    return %c0_i32, %c0_i32_0 : i32, i32
  }
  func.func @transform_2(%arg0: i32) -> (i32, i32) {
    %c0_i32 = arith.constant 0 : i32
    %c0_i32_0 = arith.constant 0 : i32
    %c0_i32_1 = arith.constant 0 : i32
    return %c0_i32, %c0_i32_0 : i32, i32
  }
  func.func @transform_3(%arg0: i32) -> (i32, i32) {
    %c0_i32 = arith.constant 0 : i32
    %c0_i32_0 = arith.constant 0 : i32
    %c0_i32_1 = arith.constant 0 : i32
    return %c0_i32, %c0_i32_0 : i32, i32
  }
  func.func @transform_4(%arg0: i32) -> (i32, i32) {
    %c0_i32 = arith.constant 0 : i32
    %c0_i32_0 = arith.constant 0 : i32
    %c0_i32_1 = arith.constant 0 : i32
    return %c0_i32, %c0_i32_0 : i32, i32
  }
  func.func @transform_5(%arg0: i32) -> (i32, i32) {
    %c0_i32 = arith.constant 0 : i32
    %c0_i32_0 = arith.constant 0 : i32
    %c0_i32_1 = arith.constant 0 : i32
    return %c0_i32, %c0_i32_0 : i32, i32
  }
  func.func @transform_6(%arg0: i32) -> (i32, i32) {
    %c0_i32 = arith.constant 0 : i32
    %c0_i32_0 = arith.constant 0 : i32
    %c0_i32_1 = arith.constant 0 : i32
    return %c0_i32, %c0_i32_0 : i32, i32
  }
  func.func @transform_7(%arg0: i32) -> (i32, i32) {
    %c0_i32 = arith.constant 0 : i32
    %c0_i32_0 = arith.constant 0 : i32
    return %arg0, %c0_i32 : i32, i32
  }
}

module attributes {stable_mosaic.version = 11 : i64} {
  func.func @kernel(%arg0: i32, %arg1: memref<8x16xbf16, #tpu.memory_space<vmem>>, %arg2: memref<16x128xbf16, #tpu.memory_space<vmem>>, %arg3: memref<1x128xf32, #tpu.memory_space<vmem>>, %arg4: memref<128x32xbf16, #tpu.memory_space<vmem>>, %arg5: memref<1x32xf32, #tpu.memory_space<vmem>>, %arg6: memref<32x8xf32, #tpu.memory_space<vmem>>, %arg7: memref<8x32xf32, #tpu.memory_space<vmem>>, %arg8: memref<8x8xf32, #tpu.memory_space<vmem>>) attributes {dimension_semantics = [#tpu.dimension_semantics<parallel>], iteration_bounds = array<i64: 1>, scalar_prefetch = 0 : i64, scratch_operands = 0 : i64, tpu.core_type = #tpu.core_type<tc>, window_params = [{transform_indices = @transform_0, window_bounds = array<i64: 8, 16>}, {pipeline_mode = #tpu.pipeline_mode<synchronous>, transform_indices = @transform_1, window_bounds = array<i64: 16, 128>}, {pipeline_mode = #tpu.pipeline_mode<synchronous>, transform_indices = @transform_2, window_bounds = array<i64: 1, 128>}, {pipeline_mode = #tpu.pipeline_mode<synchronous>, transform_indices = @transform_3, window_bounds = array<i64: 128, 32>}, {pipeline_mode = #tpu.pipeline_mode<synchronous>, transform_indices = @transform_4, window_bounds = array<i64: 1, 32>}, {pipeline_mode = #tpu.pipeline_mode<synchronous>, transform_indices = @transform_5, window_bounds = array<i64: 32, 8>}, {pipeline_mode = #tpu.pipeline_mode<synchronous>, transform_indices = @transform_6, window_bounds = array<i64: 8, 32>}, {transform_indices = @transform_7, window_bounds = array<i64: 8, 8>}]} {
    %c0 = arith.constant 0 : index
    %c0_0 = arith.constant 0 : index
    %0 = vector.load %arg1[%c0, %c0_0] : memref<8x16xbf16, #tpu.memory_space<vmem>>, vector<8x16xbf16>
    %c0_1 = arith.constant 0 : index
    %c0_2 = arith.constant 0 : index
    %1 = vector.load %arg2[%c0_1, %c0_2] : memref<16x128xbf16, #tpu.memory_space<vmem>>, vector<16x128xbf16>
    %cst = arith.constant dense<0.000000e+00> : vector<8x128xf32>
    %2 = tpu.matmul %0, %1, %cst {dimension_numbers = #tpu.dot_dimension_numbers<[1], [0], [0], [1], [0, 0, 1, 1], [], []>} : vector<8x16xbf16>, vector<16x128xbf16>, vector<8x128xf32> -> vector<8x128xf32>
    %c0_3 = arith.constant 0 : index
    %c0_4 = arith.constant 0 : index
    %3 = vector.load %arg3[%c0_3, %c0_4] : memref<1x128xf32, #tpu.memory_space<vmem>>, vector<1x128xf32>
    %4 = vector.broadcast %3 : vector<1x128xf32> to vector<8x128xf32>
    %5 = arith.addf %2, %4 : vector<8x128xf32>
    %cst_5 = arith.constant 0.000000e+00 : f32
    %6 = vector.broadcast %cst_5 : f32 to vector<8x128xf32>
    %7 = arith.maximumf %5, %6 : vector<8x128xf32>
    %8 = arith.truncf %7 : vector<8x128xf32> to vector<8x128xbf16>
    %c0_6 = arith.constant 0 : index
    %c0_7 = arith.constant 0 : index
    %9 = vector.load %arg4[%c0_6, %c0_7] : memref<128x32xbf16, #tpu.memory_space<vmem>>, vector<128x32xbf16>
    %cst_8 = arith.constant dense<0.000000e+00> : vector<8x32xf32>
    %10 = tpu.matmul %8, %9, %cst_8 {dimension_numbers = #tpu.dot_dimension_numbers<[1], [0], [0], [1], [0, 0, 1, 1], [], []>} : vector<8x128xbf16>, vector<128x32xbf16>, vector<8x32xf32> -> vector<8x32xf32>
    %c0_9 = arith.constant 0 : index
    %c0_10 = arith.constant 0 : index
    %11 = vector.load %arg5[%c0_9, %c0_10] : memref<1x32xf32, #tpu.memory_space<vmem>>, vector<1x32xf32>
    %12 = vector.broadcast %11 : vector<1x32xf32> to vector<8x32xf32>
    %13 = arith.addf %10, %12 : vector<8x32xf32>
    %c0_11 = arith.constant 0 : index
    %c0_12 = arith.constant 0 : index
    %14 = vector.load %arg6[%c0_11, %c0_12] : memref<32x8xf32, #tpu.memory_space<vmem>>, vector<32x8xf32>
    %cst_13 = arith.constant dense<0.000000e+00> : vector<8x8xf32>
    %15 = tpu.matmul %13, %14, %cst_13 {dimension_numbers = #tpu.dot_dimension_numbers<[1], [0], [0], [1], [0, 0, 1, 1], [], []>} : vector<8x32xf32>, vector<32x8xf32>, vector<8x8xf32> -> vector<8x8xf32>
    %cst_14 = arith.constant 2.500000e-01 : f32
    %16 = vector.broadcast %cst_14 : f32 to vector<8x8xf32>
    %17 = arith.mulf %15, %16 : vector<8x8xf32>
    %c0_15 = arith.constant 0 : index
    %c0_16 = arith.constant 0 : index
    %18 = vector.load %arg8[%c0_15, %c0_16] : memref<8x8xf32, #tpu.memory_space<vmem>>, vector<8x8xf32>
    tpu.vector_store %arg8[%c0_15, %c0_16], %17 {strides = array<i32>} : memref<8x8xf32, #tpu.memory_space<vmem>>, vector<8x8xf32>,
    return
  }
  func.func @transform_0(%arg0: i32) -> (i32, i32) {
    %c0_i32 = arith.constant 0 : i32
    %c0_i32_0 = arith.constant 0 : i32
    return %arg0, %c0_i32 : i32, i32
  }
  func.func @transform_1(%arg0: i32) -> (i32, i32) {
    %c0_i32 = arith.constant 0 : i32
    %c0_i32_0 = arith.constant 0 : i32
    %c0_i32_1 = arith.constant 0 : i32
    return %c0_i32, %c0_i32_0 : i32, i32
  }
  func.func @transform_2(%arg0: i32) -> (i32, i32) {
    %c0_i32 = arith.constant 0 : i32
    %c0_i32_0 = arith.constant 0 : i32
    %c0_i32_1 = arith.constant 0 : i32
    return %c0_i32, %c0_i32_0 : i32, i32
  }
  func.func @transform_3(%arg0: i32) -> (i32, i32) {
    %c0_i32 = arith.constant 0 : i32
    %c0_i32_0 = arith.constant 0 : i32
    %c0_i32_1 = arith.constant 0 : i32
    return %c0_i32, %c0_i32_0 : i32, i32
  }
  func.func @transform_4(%arg0: i32) -> (i32, i32) {
    %c0_i32 = arith.constant 0 : i32
    %c0_i32_0 = arith.constant 0 : i32
    %c0_i32_1 = arith.constant 0 : i32
    return %c0_i32, %c0_i32_0 : i32, i32
  }
  func.func @transform_5(%arg0: i32) -> (i32, i32) {
    %c0_i32 = arith.constant 0 : i32
    %c0_i32_0 = arith.constant 0 : i32
    %c0_i32_1 = arith.constant 0 : i32
    return %c0_i32, %c0_i32_0 : i32, i32
  }
  func.func @transform_6(%arg0: i32) -> (i32, i32) {
    %c0_i32 = arith.constant 0 : i32
    %c0_i32_0 = arith.constant 0 : i32
    %c0_i32_1 = arith.constant 0 : i32
    return %c0_i32, %c0_i32_0 : i32, i32
  }
  func.func @transform_7(%arg0: i32) -> (i32, i32) {
    %c0_i32 = arith.constant 0 : i32
    %c0_i32_0 = arith.constant 0 : i32
    return %arg0, %c0_i32 : i32, i32
  }
}

</mosaic_0001>

<bundles_post_ra>
// kernel: tpu_custom_call.1
= control target key start
LH: loop header
LB: loop body
LE: loop exit
PB: predicated region body
PF: predicated region fallthrough
CT: control target
= control target key end

     0   :  { %v396_v1 = vmov 0.0   ;;  %vm397_vm0 = vmmov 0   ;;  %vm44_vm1 = vcmask 130048   ;;  %s490_s0 = inlined_call_operand.vmem [shape: bf16[8,16], index: 0, kind: input, shape index: {}]   ;;  %s491_s1 = inlined_call_operand.vmem [shape: bf16[16,128], index: 1, kind: input, shape index: {}]   ;;  %s492_s2 = inlined_call_operand.vmem [shape: f32[1,128], index: 2, kind: input, shape index: {}]   ;;  %s493_s3 = inlined_call_operand.vmem [shape: bf16[128,32], index: 3, kind: input, shape index: {}]   ;;  %s494_s4 = inlined_call_operand.vmem [shape: f32[1,32], index: 4, kind: input, shape index: {}]   ;;  %s495_s5 = inlined_call_operand.vmem [shape: f32[32,8], index: 5, kind: input, shape index: {}]   ;;  %s496_s6 = inlined_call_operand.vmem [shape: f32[8,32], index: 6, kind: input, shape index: {}]   ;;  %s497_s7 = inlined_call_operand.hbm [shape: f32[8,8], index: 7, kind: output, shape index: {}]  }
   0x1   :  { %v365_v0 = vld [vmem:[%s491_s1] sm:$0xff]   ;;  %325 = vmatprep.subr.bf16.mxu0 %v396_v1  ;;  %331 = vmatprep.subr.bf16.mxu1 %v396_v1  ;;  %v366_v3 = vld [vmem:[%s493_s3 + $0x38] sm:$0xff]   ;;  %v367_v4 = vld [vmem:[%s493_s3 + $0x30] sm:$0xff]  }
   0x2   :  { %v28_v2 = vld [vmem:[%s490_s0] sm:$0xf]  ;;  %326 = vmatpush3.bf16.msra.mxu0 %v365_v0  ;;  %327 = vmatprep.mubr.msk.bf16.mxu0 %vm397_vm0, %v396_v1  ;;  %v368_v5 = vld [vmem:[%s493_s3 + $0x28] sm:$0xff]  }
   0x3   :  { %347 = vmatprep.mubr.msk.bf16.mxu1 %vm397_vm0, %v396_v1  ;;  %351 = vmatprep.subr.mxu0 %v396_v1 }
   0x4   :  { %332 = vmatpush3.bf16.msra.mxu1 %v366_v3 }
   0x5   :  { %328 = vmatmul.mubr.msk.bf16.vlgmr.msra.gmra.mxu0 %vm44_vm1, %v28_v2  ;;  %333 = vmatprep.subr.bf16.mxu1 %v396_v1 }
   0x6   :  { %359 = vmatprep.mubr.msk.f32.mxu0 %vm397_vm0, %v396_v1 }
   0x8   :  { %334 = vmatpush3.bf16.msra.mxu1 %v367_v4 }
   0x9   :  { %335 = vmatprep.subr.bf16.mxu1 %v396_v1 }
   0xa   :  { %12 = vsyncpa [#allocation3], 0  ;;  %v369_v6 = vld [vmem:[%s493_s3 + $0x20] sm:$0xff]   ;;  %v370_v7 = vld [vmem:[%s493_s3 + $0x18] sm:$0xff]   ;;  %vm205_vm2 = vcmask 261120   ;;  %vm280_vm3 = vcmask 64512  }
   0xb   :  { %v371_v8 = vld [vmem:[%s493_s3 + $0x10] sm:$0xff]   ;;  %v372_v9 = vld [vmem:[%s493_s3 + $0x8] sm:$0xff]   ;;  %v373_v10 = vld [vmem:[%s493_s3] sm:$0xff]  }
   0xc   :  { %336 = vmatpush3.bf16.msra.mxu1 %v368_v5  ;;  %v204_v11 = vld [vmem:[%s495_s5 + $0x18] sm:$0xff]  ;;  %v203_v12 = vld [vmem:[%s495_s5 + $0x10] sm:$0xff]  ;;  %v202_v13 = vld [vmem:[%s495_s5 + $0x8] sm:$0xff] }
   0xd   :  { %337 = vmatprep.subr.bf16.mxu1 %v396_v1  ;;  %352 = vmatpush3.msra.mxu0 %v204_v11  ;;  %v296_v14 = vld [vmem:[%s492_s2] ss:$0 sm:$0xff]  ;;  %s398_s2 = smov [#allocation2]  }
   0xe   :  { %353 = vmatprep.subr.mxu0 %v396_v1  ;;  %v201_v22 = vld [vmem:[%s495_s5] sm:$0xff]  ;;  %s288_s6 = sshll.u32 %s398_s2, 4  ;;  %s289_s6 = int_to_ptr.vmem [resolvable:$true] %s288_s6 }
   0xf   :  { %354 = vmatpush3.msra.mxu0 %v203_v12  ;;  %v299_v23 = vld [vmem:[%s494_s4] ss:$0 sm:$0xff]  ;;  %s374_s5 = scalar_lea.vmem %s289_s6, 128  ;;  %p379_p1 = scmp.lt.s32.totalorder %s289_s6, %s289_s6 }
  0x10   :  { %338 = vmatpush3.bf16.msra.mxu1 %v369_v6  ;;  %355 = vmatprep.subr.mxu0 %v396_v1  ;;  %p375_p0 = scmp.ne.s32.totalorder %s289_s6, %s374_s5  ;;  %p380_p2 = scmp.lt.s32.totalorder %s374_s5, %s374_s5 }
  0x11   :  { %339 = vmatprep.subr.bf16.mxu1 %v396_v1  ;;  %356 = vmatpush3.msra.mxu0 %v202_v13 }
  0x12   :  { %357 = vmatprep.subr.mxu0 %v396_v1  ;;  %p381_p3 = por %p380_p2, %p379_p1 }
  0x13   :  { %358 = vmatpush3.msra.mxu0 %v201_v22 }
  0x14   :  { %340 = vmatpush3.bf16.msra.mxu1 %v370_v7  ;;  %p382_p4 = pnand %p381_p3, %p375_p0 }
  0x15   :  { %341 = vmatprep.subr.bf16.mxu1 %v396_v1 }
  0x18   :  { %342 = vmatpush3.bf16.msra.mxu1 %v371_v8 }
  0x19   :  { %343 = vmatprep.subr.bf16.mxu1 %v396_v1 }
  0x1c   :  { %344 = vmatpush3.bf16.msra.mxu1 %v372_v9 }
  0x1d   :  { %345 = vmatprep.subr.bf16.mxu1 %v396_v1 }
  0x20   :  { %346 = vmatpush3.bf16.msra.mxu1 %v373_v10 }
  0xc5   :  { %v82_v15 = vpop.f32.mrf.mxu0 }
  0xc6   :  { %v83_v16 = vadd.f32 %v296_v14, %v82_v15 }
  0xc7   :  { %v329_v17 = vpop.f32.mrf.mxu0 }
  0xc8   :  { %v88_v18 = vmax.f32 %v83_v16, 0.0 }
  0xc9   :  { %v85_v19 = vpop.f32.mrf.mxu0 }
  0xca   :  { %v89_v20 = vpack.c.bf16 %v88_v18, %v88_v18 }
  0xcb   :  { %v330_v21 = vpop.f32.mrf.mxu0 }
  0xcc   :  { %348 = vmatmul.mubr.bf16.vlgmr.msra.gmra.mxu1 %v89_v20 }
 0x18c   :  { %v195_v24 = vpop.f32.mrf.mxu1 }
 0x18d   :  { %v196_v25 = vadd.f32 %v299_v23, %v195_v24 }
 0x18e   :  { %v349_v26 = vpop.f32.mrf.mxu1 }
 0x18f   :  { %360 = vmatmul.mubr.msk.f32.vlgmr.msra.gmra.mxu0 %vm205_vm2, %v196_v25 }
 0x190   :  { %v198_v27 = vpop.f32.mrf.mxu1 }
 0x192   :  { %v350_v28 = vpop.f32.mrf.mxu1 }
 0x24f   :  { %v275_v29 = vpop.f32.mrf.mxu0 }
 0x250   :  { %v279_v30 = vmul.f32 0.25, %v275_v29 }
 0x251   :  { %v361_v31 = vpop.f32.mrf.mxu0 }
 0x252   :  { %281 = vst.msk [vmem:[#allocation2] sm:$0xff] %vm280_vm3, %v279_v30 }
 0x253   :  { %385 = shalt.err (!%p382_p4)
}
 0x254   :  { %291 = dma.vmem_to_hbm [thread:$0]  %s289_s6, 128, %s497_s7, [#allocation3]  }
 0x255   :  { %394 = dma.done.wait [#allocation3], 128  }
 0x256   :  { %395 = vsyncadd [#allocation3], 4294967168 }
 0x257   :  { %295 = vsyncpa [#allocation3], 1 }

// kernel: tpu_custom_call.1
= control target key start
LH: loop header
LB: loop body
LE: loop exit
PB: predicated region body
PF: predicated region fallthrough
CT: control target
= control target key end

     0   :  { %v396_v1 = vmov 0.0   ;;  %vm397_vm0 = vmmov 0   ;;  %vm44_vm1 = vcmask 130048   ;;  %s490_s0 = inlined_call_operand.vmem [shape: bf16[8,16], index: 0, kind: input, shape index: {}]   ;;  %s491_s1 = inlined_call_operand.vmem [shape: bf16[16,128], index: 1, kind: input, shape index: {}]   ;;  %s492_s2 = inlined_call_operand.vmem [shape: f32[1,128], index: 2, kind: input, shape index: {}]   ;;  %s493_s3 = inlined_call_operand.vmem [shape: bf16[128,32], index: 3, kind: input, shape index: {}]   ;;  %s494_s4 = inlined_call_operand.vmem [shape: f32[1,32], index: 4, kind: input, shape index: {}]   ;;  %s495_s5 = inlined_call_operand.vmem [shape: f32[32,8], index: 5, kind: input, shape index: {}]   ;;  %s496_s6 = inlined_call_operand.vmem [shape: f32[8,32], index: 6, kind: input, shape index: {}]   ;;  %s497_s7 = inlined_call_operand.hbm [shape: f32[8,8], index: 7, kind: output, shape index: {}]  }
   0x1   :  { %v365_v0 = vld [vmem:[%s491_s1] sm:$0xff]   ;;  %325 = vmatprep.subr.bf16.mxu0 %v396_v1  ;;  %331 = vmatprep.subr.bf16.mxu1 %v396_v1  ;;  %v366_v3 = vld [vmem:[%s493_s3 + $0x38] sm:$0xff]   ;;  %v367_v4 = vld [vmem:[%s493_s3 + $0x30] sm:$0xff]  }
   0x2   :  { %v28_v2 = vld [vmem:[%s490_s0] sm:$0xf]  ;;  %326 = vmatpush3.bf16.msra.mxu0 %v365_v0  ;;  %327 = vmatprep.mubr.msk.bf16.mxu0 %vm397_vm0, %v396_v1  ;;  %v368_v5 = vld [vmem:[%s493_s3 + $0x28] sm:$0xff]  }
   0x3   :  { %347 = vmatprep.mubr.msk.bf16.mxu1 %vm397_vm0, %v396_v1  ;;  %351 = vmatprep.subr.mxu0 %v396_v1 }
   0x4   :  { %332 = vmatpush3.bf16.msra.mxu1 %v366_v3 }
   0x5   :  { %328 = vmatmul.mubr.msk.bf16.vlgmr.msra.gmra.mxu0 %vm44_vm1, %v28_v2  ;;  %333 = vmatprep.subr.bf16.mxu1 %v396_v1 }
   0x6   :  { %359 = vmatprep.mubr.msk.f32.mxu0 %vm397_vm0, %v396_v1 }
   0x8   :  { %334 = vmatpush3.bf16.msra.mxu1 %v367_v4 }
   0x9   :  { %335 = vmatprep.subr.bf16.mxu1 %v396_v1 }
   0xa   :  { %12 = vsyncpa [#allocation3], 0  ;;  %v369_v6 = vld [vmem:[%s493_s3 + $0x20] sm:$0xff]   ;;  %v370_v7 = vld [vmem:[%s493_s3 + $0x18] sm:$0xff]   ;;  %vm205_vm2 = vcmask 261120   ;;  %vm280_vm3 = vcmask 64512  }
   0xb   :  { %v371_v8 = vld [vmem:[%s493_s3 + $0x10] sm:$0xff]   ;;  %v372_v9 = vld [vmem:[%s493_s3 + $0x8] sm:$0xff]   ;;  %v373_v10 = vld [vmem:[%s493_s3] sm:$0xff]  }
   0xc   :  { %336 = vmatpush3.bf16.msra.mxu1 %v368_v5  ;;  %v204_v11 = vld [vmem:[%s495_s5 + $0x18] sm:$0xff]  ;;  %v203_v12 = vld [vmem:[%s495_s5 + $0x10] sm:$0xff]  ;;  %v202_v13 = vld [vmem:[%s495_s5 + $0x8] sm:$0xff] }
   0xd   :  { %337 = vmatprep.subr.bf16.mxu1 %v396_v1  ;;  %352 = vmatpush3.msra.mxu0 %v204_v11  ;;  %v296_v14 = vld [vmem:[%s492_s2] ss:$0 sm:$0xff]  ;;  %s398_s2 = smov [#allocation2]  }
   0xe   :  { %353 = vmatprep.subr.mxu0 %v396_v1  ;;  %v201_v22 = vld [vmem:[%s495_s5] sm:$0xff]  ;;  %s288_s6 = sshll.u32 %s398_s2, 4  ;;  %s289_s6 = int_to_ptr.vmem [resolvable:$true] %s288_s6 }
   0xf   :  { %354 = vmatpush3.msra.mxu0 %v203_v12  ;;  %v299_v23 = vld [vmem:[%s494_s4] ss:$0 sm:$0xff]  ;;  %s374_s5 = scalar_lea.vmem %s289_s6, 128  ;;  %p379_p1 = scmp.lt.s32.totalorder %s289_s6, %s289_s6 }
  0x10   :  { %338 = vmatpush3.bf16.msra.mxu1 %v369_v6  ;;  %355 = vmatprep.subr.mxu0 %v396_v1  ;;  %p375_p0 = scmp.ne.s32.totalorder %s289_s6, %s374_s5  ;;  %p380_p2 = scmp.lt.s32.totalorder %s374_s5, %s374_s5 }
  0x11   :  { %339 = vmatprep.subr.bf16.mxu1 %v396_v1  ;;  %356 = vmatpush3.msra.mxu0 %v202_v13 }
  0x12   :  { %357 = vmatprep.subr.mxu0 %v396_v1  ;;  %p381_p3 = por %p380_p2, %p379_p1 }
  0x13   :  { %358 = vmatpush3.msra.mxu0 %v201_v22 }
  0x14   :  { %340 = vmatpush3.bf16.msra.mxu1 %v370_v7  ;;  %p382_p4 = pnand %p381_p3, %p375_p0 }
  0x15   :  { %341 = vmatprep.subr.bf16.mxu1 %v396_v1 }
  0x18   :  { %342 = vmatpush3.bf16.msra.mxu1 %v371_v8 }
  0x19   :  { %343 = vmatprep.subr.bf16.mxu1 %v396_v1 }
  0x1c   :  { %344 = vmatpush3.bf16.msra.mxu1 %v372_v9 }
  0x1d   :  { %345 = vmatprep.subr.bf16.mxu1 %v396_v1 }
  0x20   :  { %346 = vmatpush3.bf16.msra.mxu1 %v373_v10 }
  0xc5   :  { %v82_v15 = vpop.f32.mrf.mxu0 }
  0xc6   :  { %v83_v16 = vadd.f32 %v296_v14, %v82_v15 }
  0xc7   :  { %v329_v17 = vpop.f32.mrf.mxu0 }
  0xc8   :  { %v88_v18 = vmax.f32 %v83_v16, 0.0 }
  0xc9   :  { %v85_v19 = vpop.f32.mrf.mxu0 }
  0xca   :  { %v89_v20 = vpack.c.bf16 %v88_v18, %v88_v18 }
  0xcb   :  { %v330_v21 = vpop.f32.mrf.mxu0 }
  0xcc   :  { %348 = vmatmul.mubr.bf16.vlgmr.msra.gmra.mxu1 %v89_v20 }
 0x18c   :  { %v195_v24 = vpop.f32.mrf.mxu1 }
 0x18d   :  { %v196_v25 = vadd.f32 %v299_v23, %v195_v24 }
 0x18e   :  { %v349_v26 = vpop.f32.mrf.mxu1 }
 0x18f   :  { %360 = vmatmul.mubr.msk.f32.vlgmr.msra.gmra.mxu0 %vm205_vm2, %v196_v25 }
 0x190   :  { %v198_v27 = vpop.f32.mrf.mxu1 }
 0x192   :  { %v350_v28 = vpop.f32.mrf.mxu1 }
 0x24f   :  { %v275_v29 = vpop.f32.mrf.mxu0 }
 0x250   :  { %v279_v30 = vmul.f32 0.25, %v275_v29 }
 0x251   :  { %v361_v31 = vpop.f32.mrf.mxu0 }
 0x252   :  { %281 = vst.msk [vmem:[#allocation2] sm:$0xff] %vm280_vm3, %v279_v30 }
 0x253   :  { %385 = shalt.err (!%p382_p4)
}
 0x254   :  { %291 = dma.vmem_to_hbm [thread:$0]  %s289_s6, 128, %s497_s7, [#allocation3]  }
 0x255   :  { %394 = dma.done.wait [#allocation3], 128  }
 0x256   :  { %395 = vsyncadd [#allocation3], 4294967168 }
 0x257   :  { %295 = vsyncpa [#allocation3], 1 }

</bundles_post_ra>
